<compile_context>
chip_gen: v7x
topology: tpu7x:2x2x1
jax: 0.10.0
libtpu: 0.0.40
codegen_flags: <defaults>
</compile_context>

<pallas_src>
import math
import functools

import jax
import jax.numpy as jnp
from jax.experimental import pallas as pl
from jax.experimental.pallas import tpu as pltpu


def _block_kernel(*refs, rms_scale, has_scale_shift):
    if has_scale_shift:
        x_ref, w_ref, b_ref, g_ref, sc_ref, sh_ref, o_ref = refs
    else:
        x_ref, w_ref, b_ref, g_ref, o_ref = refs

    x = x_ref[0]                                   # (Cin, TN), input dtype
    w = w_ref[...]                                 # (Cout, Cin), input dtype

    # 1x1 conv == channel matmul on the MXU, f32 accumulate
    y = jnp.dot(w, x, preferred_element_type=jnp.float32)          # (Cout, TN) f32
    y = y + b_ref[...]                                             # (Cout, 1) broadcast

    # RMSNorm (F.normalize over channels): y / max(||y||, 1e-12) * g * sqrt(Cout)
    # rsqrt on sum-of-squares (EUP); eps clamp on sumsq (eps^2) preserves F.normalize semantics.
    sumsq = jnp.sum(y * y, axis=0, keepdims=True)                  # (1, TN) — XLU sublane reduce
    inv = jax.lax.rsqrt(jnp.maximum(sumsq, 1e-24))

    # fuse all per-channel affine factors into a single (Cout, 1) multiplier
    if has_scale_shift:
        m = g_ref[...] * rms_scale * (sc_ref[0] + 1.0)
        y = y * inv * m + sh_ref[0]
    else:
        m = g_ref[...] * rms_scale
        y = y * inv * m

    # SiLU
    y = y * jax.nn.sigmoid(y)

    # TODO(synk): nn.Dropout is identity in eval mode; training-mode dropout not implemented.
    o_ref[0] = y.astype(o_ref.dtype)


def _pick_tile_n(n_node, max_tile):
    """Node-tile width: full extent for small graphs, else a 128-multiple (lane-dense)."""
    if n_node <= max_tile:
        return n_node
    for t in range(max_tile, 127, -128):          # prefer a 128-multiple that divides n_node
        if n_node % t == 0:
            return t
    return max_tile                               # ragged tail handled by Pallas edge padding


def block_forward(x_ncw, conv_w, conv_b, rms_g, scale_shift=None, max_tile_n=1024):
    """
    x_ncw:   [bs, dim_in, n_node]  (PyTorch NCW layout, consumed directly — no transpose)
    conv_w:  [dim_out, dim_in, 1]  (PyTorch Conv1d weight)
    conv_b:  [dim_out]
    rms_g:   [1, dim_out, 1]
    scale_shift: optional tuple (scale, shift), each [bs, dim_out, 1]
    returns: [bs, dim_out, n_node], same dtype as x_ncw
    """
    bs, dim_in, n_node = x_ncw.shape
    dim_out = conv_w.shape[0]

    tn = _pick_tile_n(n_node, max_tile_n)
    grid = (bs, pl.cdiv(n_node, tn))

    w = conv_w[:, :, 0].astype(x_ncw.dtype)                 # (Cout, Cin) — keep MXU input dtype
    b = conv_b.reshape(dim_out, 1).astype(jnp.float32)      # (Cout, 1)
    g = rms_g.reshape(dim_out, 1).astype(jnp.float32)       # (Cout, 1)

    has_ss = scale_shift is not None
    args = [x_ncw, w, b, g]
    in_specs = [
        pl.BlockSpec((1, dim_in, tn), lambda bi, ti: (bi, 0, ti)),
        pl.BlockSpec((dim_out, dim_in), lambda bi, ti: (0, 0)),
        pl.BlockSpec((dim_out, 1), lambda bi, ti: (0, 0)),
        pl.BlockSpec((dim_out, 1), lambda bi, ti: (0, 0)),
    ]
    if has_ss:
        ss_scale, ss_shift = scale_shift
        args += [ss_scale.astype(jnp.float32), ss_shift.astype(jnp.float32)]
        in_specs += [
            pl.BlockSpec((1, dim_out, 1), lambda bi, ti: (bi, 0, 0)),
            pl.BlockSpec((1, dim_out, 1), lambda bi, ti: (bi, 0, 0)),
        ]

    kernel = functools.partial(
        _block_kernel,
        rms_scale=float(math.sqrt(dim_out)),
        has_scale_shift=has_ss,
    )

    out = pl.pallas_call(
        kernel,
        out_shape=jax.ShapeDtypeStruct((bs, dim_out, n_node), x_ncw.dtype),
        grid_spec=pltpu.PrefetchScalarGridSpec(
            num_scalar_prefetch=0,
            grid=grid,
            in_specs=in_specs,
            out_specs=pl.BlockSpec((1, dim_out, tn), lambda bi, ti: (bi, 0, ti)),
        ),
        compiler_params=pltpu.CompilerParams(
            dimension_semantics=("parallel", "parallel"),
            vmem_limit_bytes=32 * 1024 * 1024,
        ),
    )(*args)

    return out


def _reference(x_ncw, conv_w, conv_b, rms_g, scale_shift=None):
    # pure-JAX reference mirroring the PyTorch module (eval mode), exact sqrt + divide
    y = jnp.einsum('bcn,oc->bon', x_ncw.astype(jnp.float32),
                   conv_w[:, :, 0].astype(jnp.float32)) + conv_b[None, :, None]
    norm = jnp.sqrt(jnp.sum(y * y, axis=1, keepdims=True))
    y = y / jnp.maximum(norm, 1e-12)
    y = y * rms_g * math.sqrt(conv_w.shape[0])
    if scale_shift is not None:
        sc, sh = scale_shift
        y = y * (sc + 1.0) + sh
    return y * jax.nn.sigmoid(y)


if __name__ == "__main__":
    key = jax.random.PRNGKey(0)
    bs, dim_in, dim_out, n_node = 2, 4, 8, 16

    k1, k2, k3, k4, k5 = jax.random.split(key, 5)
    x = jax.random.normal(k1, (bs, dim_in, n_node), jnp.float32)
    conv_w = jax.random.normal(k2, (dim_out, dim_in, 1), jnp.float32) * 0.2
    conv_b = jax.random.normal(k3, (dim_out,), jnp.float32) * 0.1
    rms_g = jnp.ones((1, dim_out, 1), jnp.float32)
    ss_scale = jax.random.normal(k4, (bs, dim_out, 1), jnp.float32) * 0.1
    ss_shift = jax.random.normal(k5, (bs, dim_out, 1), jnp.float32) * 0.1

    # with scale_shift
    out = jax.block_until_ready(
        block_forward(x, conv_w, conv_b, rms_g, scale_shift=(ss_scale, ss_shift)))
    ref = _reference(x, conv_w, conv_b, rms_g, scale_shift=(ss_scale, ss_shift))
    assert out.shape == (bs, dim_out, n_node)
    assert jnp.allclose(out, ref, atol=2e-3, rtol=2e-3), float(jnp.max(jnp.abs(out - ref)))

    # scale_shift=None specialization (no zero-tensor DMAs)
    out2 = jax.block_until_ready(block_forward(x, conv_w, conv_b, rms_g))
    ref2 = _reference(x, conv_w, conv_b, rms_g)
    assert jnp.allclose(out2, ref2, atol=2e-3, rtol=2e-3)

    # multi-tile path: n_node split into lane-dense 128-wide node tiles
    n_node2 = 256
    x2 = jax.random.normal(k1, (bs, dim_in, n_node2), jnp.float32)
    out3 = jax.block_until_ready(
        block_forward(x2, conv_w, conv_b, rms_g,
                      scale_shift=(ss_scale, ss_shift), max_tile_n=128))
    ref3 = _reference(x2, conv_w, conv_b, rms_g, scale_shift=(ss_scale, ss_shift))
    assert out3.shape == (bs, dim_out, n_node2)
    assert jnp.allclose(out3, ref3, atol=2e-3, rtol=2e-3)

    print("KERNEL_OK")
</pallas_src>

<mosaic_0001>
module attributes {stable_mosaic.version = 11 : i64} {
  func.func @_block_kernel(%arg0: i32, %arg1: i32, %arg2: memref<1x4x16xf32, #tpu.memory_space<vmem>>, %arg3: memref<8x4xf32, #tpu.memory_space<vmem>>, %arg4: memref<8x1xf32, #tpu.memory_space<vmem>>, %arg5: memref<8x1xf32, #tpu.memory_space<vmem>>, %arg6: memref<1x8x1xf32, #tpu.memory_space<vmem>>, %arg7: memref<1x8x1xf32, #tpu.memory_space<vmem>>, %arg8: memref<1x8x16xf32, #tpu.memory_space<vmem>>) attributes {dimension_semantics = [#tpu.dimension_semantics<parallel>, #tpu.dimension_semantics<parallel>], iteration_bounds = array<i64: 2, 1>, scalar_prefetch = 0 : i64, scratch_operands = 0 : i64, tpu.core_type = #tpu.core_type<tc>, window_params = [{transform_indices = @transform_0, window_bounds = array<i64: 1, 4, 16>}, {pipeline_mode = #tpu.pipeline_mode<synchronous>, transform_indices = @transform_1, window_bounds = array<i64: 8, 4>}, {pipeline_mode = #tpu.pipeline_mode<synchronous>, transform_indices = @transform_2, window_bounds = array<i64: 8, 1>}, {pipeline_mode = #tpu.pipeline_mode<synchronous>, transform_indices = @transform_3, window_bounds = array<i64: 8, 1>}, {transform_indices = @transform_4, window_bounds = array<i64: 1, 8, 1>}, {transform_indices = @transform_5, window_bounds = array<i64: 1, 8, 1>}, {transform_indices = @transform_6, window_bounds = array<i64: 1, 8, 16>}]} {
    %c0 = arith.constant 0 : index
    %c0_0 = arith.constant 0 : index
    %c0_1 = arith.constant 0 : index
    %0 = vector.load %arg2[%c0, %c0_0, %c0_1] : memref<1x4x16xf32, #tpu.memory_space<vmem>>, vector<1x4x16xf32>
    %1 = vector.shape_cast %0 : vector<1x4x16xf32> to vector<4x16xf32>
    %c0_2 = arith.constant 0 : index
    %c0_3 = arith.constant 0 : index
    %2 = vector.load %arg3[%c0_2, %c0_3] : memref<8x4xf32, #tpu.memory_space<vmem>>, vector<8x4xf32>
    %cst = arith.constant dense<0.000000e+00> : vector<8x16xf32>
    %3 = tpu.matmul %2, %1, %cst {dimension_numbers = #tpu.dot_dimension_numbers<[1], [0], [0], [1], [0, 0, 1, 1], [], []>} : vector<8x4xf32>, vector<4x16xf32>, vector<8x16xf32> -> vector<8x16xf32>
    %c0_4 = arith.constant 0 : index
    %c0_5 = arith.constant 0 : index
    %4 = vector.load %arg4[%c0_4, %c0_5] : memref<8x1xf32, #tpu.memory_space<vmem>>, vector<8x1xf32>
    %5 = vector.broadcast %4 : vector<8x1xf32> to vector<8x16xf32>
    %6 = arith.addf %3, %5 : vector<8x16xf32>
    %7 = arith.mulf %6, %6 : vector<8x16xf32>
    %cst_6 = arith.constant dense<0.000000e+00> : vector<16xf32>
    %8 = vector.multi_reduction <add>, %7, %cst_6 [0] : vector<8x16xf32> to vector<16xf32>
    %9 = vector.shape_cast %8 : vector<16xf32> to vector<1x16xf32>
    %cst_7 = arith.constant 1.000000e-24 : f32
    %10 = vector.broadcast %cst_7 : f32 to vector<1x16xf32>
    %11 = arith.maximumf %9, %10 : vector<1x16xf32>
    %12 = math.rsqrt %11 : vector<1x16xf32>
    %c0_8 = arith.constant 0 : index
    %c0_9 = arith.constant 0 : index
    %13 = vector.load %arg5[%c0_8, %c0_9] : memref<8x1xf32, #tpu.memory_space<vmem>>, vector<8x1xf32>
    %cst_10 = arith.constant 2.82842708 : f32
    %14 = vector.broadcast %cst_10 : f32 to vector<8x1xf32>
    %15 = arith.mulf %13, %14 : vector<8x1xf32>
    %c0_11 = arith.constant 0 : index
    %c0_12 = arith.constant 0 : index
    %c0_13 = arith.constant 0 : index
    %16 = vector.load %arg6[%c0_11, %c0_12, %c0_13] : memref<1x8x1xf32, #tpu.memory_space<vmem>>, vector<1x8x1xf32>
    %17 = vector.shape_cast %16 : vector<1x8x1xf32> to vector<8x1xf32>
    %cst_14 = arith.constant 1.000000e+00 : f32
    %18 = vector.broadcast %cst_14 : f32 to vector<8x1xf32>
    %19 = arith.addf %17, %18 : vector<8x1xf32>
    %20 = arith.mulf %15, %19 : vector<8x1xf32>
    %21 = vector.broadcast %12 : vector<1x16xf32> to vector<8x16xf32>
    %22 = arith.mulf %6, %21 : vector<8x16xf32>
    %23 = vector.broadcast %20 : vector<8x1xf32> to vector<8x16xf32>
    %24 = arith.mulf %22, %23 : vector<8x16xf32>
    %c0_15 = arith.constant 0 : index
    %c0_16 = arith.constant 0 : index
    %c0_17 = arith.constant 0 : index
    %25 = vector.load %arg7[%c0_15, %c0_16, %c0_17] : memref<1x8x1xf32, #tpu.memory_space<vmem>>, vector<1x8x1xf32>
    %26 = vector.shape_cast %25 : vector<1x8x1xf32> to vector<8x1xf32>
    %27 = vector.broadcast %26 : vector<8x1xf32> to vector<8x16xf32>
    %28 = arith.addf %24, %27 : vector<8x16xf32>
    %29 = arith.negf %28 : vector<8x16xf32>
    %30 = math.exp %29 : vector<8x16xf32>
    %cst_18 = arith.constant 1.000000e+00 : f32
    %31 = vector.broadcast %cst_18 : f32 to vector<8x16xf32>
    %32 = arith.addf %31, %30 : vector<8x16xf32>
    %33 = arith.divf %31, %32 : vector<8x16xf32>
    %34 = arith.mulf %28, %33 : vector<8x16xf32>
    %c0_19 = arith.constant 0 : index
    %c0_20 = arith.constant 0 : index
    %c0_21 = arith.constant 0 : index
    %35 = vector.load %arg8[%c0_19, %c0_20, %c0_21] : memref<1x8x16xf32, #tpu.memory_space<vmem>>, vector<1x8x16xf32>
    %36 = vector.shape_cast %35 : vector<1x8x16xf32> to vector<8x16xf32>
    %37 = vector.shape_cast %34 : vector<8x16xf32> to vector<1x8x16xf32>
    tpu.vector_store %arg8[%c0_19, %c0_20, %c0_21], %37 {strides = array<i32>} : memref<1x8x16xf32, #tpu.memory_space<vmem>>, vector<1x8x16xf32>,
    return
  }
  func.func @transform_0(%arg0: i32, %arg1: i32) -> (i32, i32, i32) {
    %c0_i32 = arith.constant 0 : i32
    %c0_i32_0 = arith.constant 0 : i32
    return %arg0, %c0_i32, %arg1 : i32, i32, i32
  }
  func.func @transform_1(%arg0: i32, %arg1: i32) -> (i32, i32) {
    %c0_i32 = arith.constant 0 : i32
    %c0_i32_0 = arith.constant 0 : i32
    %c0_i32_1 = arith.constant 0 : i32
    return %c0_i32, %c0_i32_0 : i32, i32
  }
  func.func @transform_2(%arg0: i32, %arg1: i32) -> (i32, i32) {
    %c0_i32 = arith.constant 0 : i32
    %c0_i32_0 = arith.constant 0 : i32
    %c0_i32_1 = arith.constant 0 : i32
    return %c0_i32, %c0_i32_0 : i32, i32
  }
  func.func @transform_3(%arg0: i32, %arg1: i32) -> (i32, i32) {
    %c0_i32 = arith.constant 0 : i32
    %c0_i32_0 = arith.constant 0 : i32
    %c0_i32_1 = arith.constant 0 : i32
    return %c0_i32, %c0_i32_0 : i32, i32
  }
  func.func @transform_4(%arg0: i32, %arg1: i32) -> (i32, i32, i32) {
    %c0_i32 = arith.constant 0 : i32
    %c0_i32_0 = arith.constant 0 : i32
    %c0_i32_1 = arith.constant 0 : i32
    return %arg0, %c0_i32, %c0_i32_0 : i32, i32, i32
  }
  func.func @transform_5(%arg0: i32, %arg1: i32) -> (i32, i32, i32) {
    %c0_i32 = arith.constant 0 : i32
    %c0_i32_0 = arith.constant 0 : i32
    %c0_i32_1 = arith.constant 0 : i32
    return %arg0, %c0_i32, %c0_i32_0 : i32, i32, i32
  }
  func.func @transform_6(%arg0: i32, %arg1: i32) -> (i32, i32, i32) {
    %c0_i32 = arith.constant 0 : i32
    %c0_i32_0 = arith.constant 0 : i32
    return %arg0, %c0_i32, %arg1 : i32, i32, i32
  }
}

</mosaic_0001>

<bundles_post_ra>
// kernel: tpu_custom_call.1
= control target key start
LH: loop header
LB: loop body
LE: loop exit
PB: predicated region body
PF: predicated region fallthrough
CT: control target
= control target key end

     0   :  { %11 = vsyncpa [#allocation3], 0  ;;  %s877_s0 = inlined_call_operand.vmem [shape: f32[2,4,16], index: 0, kind: input, shape index: {}]   ;;  %s878_s1 = inlined_call_operand.vmem [shape: f32[8,4], index: 1, kind: input, shape index: {}]   ;;  %s879_s2 = inlined_call_operand.vmem [shape: f32[8,1], index: 2, kind: input, shape index: {}]   ;;  %s880_s3 = inlined_call_operand.vmem [shape: f32[8,1], index: 3, kind: input, shape index: {}]   ;;  %s881_s4 = inlined_call_operand.vmem [shape: f32[2,8,1], index: 4, kind: input, shape index: {}]   ;;  %s882_s5 = inlined_call_operand.vmem [shape: f32[2,8,1], index: 5, kind: input, shape index: {}]   ;;  %s883_s6 = inlined_call_operand.hbm [shape: f32[2,8,16], index: 6, kind: output, shape index: {}]  }
   0x1   :  { %13 = vsyncpa [#allocation3 + $0x1], 0  ;;  %s748_s21 = smov 0   ;;  %s750_s22 = smov 0  }
   0x2   :  { %s752_s23 = smov 0   ;;  %s754_s24 = smov 0  }
   0x3   :  { %s756_s25 = smov 0   ;;  %s758_s26 = smov 0  }
   0x4 LB: > { %s540_s27 = sadd.s32 4294967295, %s707_s26   ;;  %s541_s28 = sadd.s32 4294967294, %s707_s26   ;;  %s707_s26 = sphi %s758_s26, %s19_s26   ;;  %s703_s25 = sphi %s756_s25, %s890_s25   ;;  %s699_s24 = sphi %s754_s24, %s889_s24   ;;  %s695_s23 = sphi %s752_s23, %s888_s23   ;;  %s691_s22 = sphi %s750_s22, %s887_s22   ;;  %s687_s21 = sphi %s748_s21, %s886_s21  }
   0x5   : > { %s31_s29 = sadd.s32 1, %s703_s25  ;;  %s183_s30 = sadd.s32 1, %s695_s23 }
   0x6   : > { %p33_p0 = scmp.ge.s32.totalorder %s31_s29, 2  ;;  %p193_p1 = scmp.ne.s32.totalorder %s695_s23, %s691_s22 }
   0x7   : > { %p194_p2 = scmp.eq.s32.totalorder %s540_s27, 1  ;;  %p199_p3 = scmp.ne.s32.totalorder %s691_s22, %s687_s21 }
   0x8   : > { %s892_s29 = smov (%p33_p0, %s31_s29), 0  ;;  %p200_p5 = scmp.eq.s32.totalorder %s541_s28, 1 }
   0x9   : > { %p788_p4 = por %p194_p2, %p193_p1  ;;  %s178_s8 = ssub.s32 %s703_s25, %s892_s29 }
   0xa   : > { %p544_p6 = scmp.ge.s32.totalorder %s707_s26, 1  ;;  %p181_p7 = scmp.eq.s32.totalorder %s178_s8, 0 }
   0xb   : > { %p795_p8 = por %p200_p5, %p199_p3  ;;  %p251_p9 = scmp.lt.s32.totalorder %s707_s26, 3 }
   0xc   : > { %s801_s10 = scalar_select %p181_p7, %s695_s23, %s183_s30  }
   0xd   : > { %p252_p10 = pnand %p544_p6, %p251_p9 }
   0xe   : > { %p291_p11 = scmp.lt.s32.totalorder (!%p252_p10), %s699_s24, 1  ;;  %v709_v0 = vmov (!%p252_p10), 0.0   ;;  %vm710_vm0 = vmmov (!%p252_p10), 0   ;;  %v308_v1 = vld [vmem:[%s879_s2] sm:$0xff] (!%p252_p10)  ;;  %v711_v2 = vmov (!%p252_p10), 0   ;;  %vm318_vm1 = vcmask (!%p252_p10), 1043456  }
   0xf   : > { %255 = sbr.rel (%p252_p10) target bundleno = 318 (0x13e), region = 44  ;;  %558 = vmatprep.subr.mxu0 (!%p252_p10), %v709_v0  ;;  %560 = vmatprep.mubr.msk.f32.mxu0 (!%p252_p10), %vm710_vm0, %v709_v0  ;;  %v403_v3 = vld [vmem:[%s880_s3] sm:$0xff] (!%p252_p10)  ;;  %vm314_vm2 = vcmask (!%p252_p10), 31744   ;;  %vm393_vm3 = vcmask (!%p252_p10), 130048   ;;  %s288_s15 = sand.u32 (!%p252_p10), 1, %s691_s22  }
  0x10   : > { %621 = vset.pattern.permute.xlu0 (!%p252_p10), %v711_v2  ;;  %622 = vset.pattern.permute.xlu1 (!%p252_p10), %v711_v2  ;;  %v307_v4 = vld [vmem:[%s878_s1] sm:$0xff] (!%p252_p10)  ;;  %v404_v5 = vmul.f32 (!%p252_p10), 2.828427, %v403_v3  ;;  %s431_s30 = scalar_lea.sflag (!%p252_p10), [#allocation3], %s288_s15 }
  0x11   : > { %311 = vperm.xlu0 (!%p252_p10), %621, %v308_v1  }
  0x16   : > { %s292_s13 = scalar_select %p291_p11, %s699_s24, 1 }
  0x18   : > { %s546_s16 = sshll.u32 %s292_s13, 2  ;;  %s547_s17 = sshll.u32 %s292_s13, 3 }
  0x19   : > { %s297_s20 = scalar_lea.vmem %s877_s0, %s546_s16  ;;  %s301_s11 = scalar_lea.vmem %s881_s4, %s547_s17 }
  0x1a   : > { %v306_v6 = vld [vmem:[%s297_s20] sm:$0xf]  ;;  %s305_s13 = scalar_lea.vmem %s882_s5, %s547_s17  ;;  %s545_s16 = sshll.u32 %s288_s15, 3 }
  0x1b   : > { %v405_v7 = vld [vmem:[%s301_s11] sm:$0xff]  ;;  %559 = vmatpush3.msk.msra.mxu0 %vm318_vm1, %v306_v6  ;;  %s553_s17 = sshll.u32 %s699_s24, 7  ;;  %s290_s18 = scalar_lea.vmem [#allocation2], %s545_s16 }
  0x1c   : > { %v406_v8 = vadd.f32 1.0, %v405_v7  ;;  %v415_v9 = vld [vmem:[%s305_s13] sm:$0xff]  ;;  %561 = vmatmul.mubr.msk.f32.vlgmr.msra.gmra.mrb[0].mxu0 %vm314_vm2, %v307_v4  ;;  %s445_s19 = sshll.u32 %s290_s18, 4  ;;  %s829_s28 = scalar_lea.hbm %s883_s6, %s553_s17  ;;  %s831_s19 = int_to_ptr.vmem [resolvable:$true] %s445_s19 }
  0x1d   : > { %418 = vperm.xlu1 %622, %v415_v9   ;;  %s629_s8 = scalar_lea.vmem %s831_s19, 128  ;;  %s712_s24 = smov [#allocation2]  }
  0x1e   : > { %v407_v10 = vmul.f32 %v406_v8, %v404_v5  ;;  %p630_p12 = scmp.ne.s32.totalorder %s831_s19, %s629_s8  ;;  %s633_s11 = sshll.u32 %s712_s24, 4  ;;  %s634_s11 = int_to_ptr.vmem [resolvable:$false] %s633_s11 }
  0x1f   : > { %s635_s12 = scalar_lea.vmem %s634_s11, 256  ;;  %p636_p1 = scmp.lt.s32.totalorder %s831_s19, %s634_s11 }
  0x20   : > { %411 = vperm.xlu0 %621, %v407_v10   ;;  %p631_p13 = pnand %p630_p12, %p788_p4  ;;  %p637_p2 = scmp.lt.s32.totalorder %s635_s12, %s629_s8 }
  0x22   : > { %p632_p0 = pneg %p631_p13  ;;  %p638_p3 = por %p637_p2, %p636_p1 }
  0x24   : > { %p639_p5 = pnand %p638_p3, %p632_p0 }
  0x90   : > { %v312_v11 = vpop.permute.xlu0 %311 }
  0x9c   : > { %v419_v27 = vpop.permute.xlu1 %418 }
  0x9f   : > { %v412_v26 = vpop.permute.xlu0 %411 }
  0xef   : > { %v388_v12 = vpop.f32.mrb[0].mxu0 }
  0xf0   : > { %v389_v13 = vadd.f32 %v388_v12, %v312_v11  ;;  %v562_v14 = vpop.f32.mrb[1].mxu0 }
  0xf2   : > { %v392_v15 = vmul.f32 %v389_v13, %v389_v13 }
  0xf4   : > { %v394_v16 = vsel %vm393_vm3, %v392_v15, 0.0 }
  0xf5   : > { %v395_v17 = vrot.slane %v394_v16, 4 }
  0xf7   : > { %v396_v18 = vadd.f32 %v395_v17, %v394_v16 }
  0xf9   : > { %v397_v19 = vrot.slane %v396_v18, 2 }
  0xfb   : > { %v398_v20 = vadd.f32 %v397_v19, %v396_v18 }
  0xfd   : > { %v399_v21 = vrot.slane %v398_v20, 1 }
  0xff   : > { %v400_v22 = vadd.f32 %v399_v21, %v398_v20 }
 0x101   : > { %v401_v23 = vmax.f32 %v400_v22, 1e-24 }
 0x103   : > { %623 = vrsqrt.f32 %v401_v23 }
 0x10d   : > { %v624_v24 = vpop.eup %623 }
 0x10e   : > { %v408_v25 = vmul.f32 %v624_v24, %v389_v13 }
 0x110   : > { %v414_v28 = vmul.f32 %v412_v26, %v408_v25 }
 0x112   : > { %v421_v29 = vadd.f32 %v419_v27, %v414_v28 }
 0x114   : > { %v551_v30 = vmul.f32 -1.442695, %v421_v29 }
 0x116   : > { %625 = vpow2.f32 %v551_v30 }
 0x120   : > { %v626_v31 = vpop.eup %625 }
 0x121   : > { %v425_v32 = vadd.f32 1.0, %v626_v31 }
 0x123   : > { %627 = vrcp.f32 %v425_v32 }
 0x12d   : > { %v628_v33 = vpop.eup %627 }
 0x12e   : > { %v428_v34 = vmul.f32 %v628_v33, %v421_v29 }
 0x130   : > { %429 = vst.msk [vmem:[%s290_s18] sm:$0xff] %vm393_vm3, %v428_v34 }
 0x131   : > { %642 = shalt.err (!%p639_p5)
}
 0x132   : > { %s643_s14 = scalar_lea.hbm %s829_s28, 128  ;;  %s647_s16 = scalar_lea.hbm %s883_s6, 256 }
 0x133   : > { %p644_p6 = scmp.ne.s32.totalorder %s829_s28, %s643_s14  ;;  %p648_p10 = scmp.lt.u32.totalorder %s829_s28, %s883_s6 }
 0x134   : > { %p649_p11 = scmp.lt.u32.totalorder %s647_s16, %s643_s14  ;;  %p651_p13 = scmp.lt.u32.totalorder %s643_s14, %s829_s28 }
 0x135   : > { %p645_p7 = pnand %p644_p6, %p788_p4 }
 0x136   : > { %p650_p12 = por %p649_p11, %p648_p10 }
 0x137   : > { %p646_p9 = pneg %p645_p7 }
 0x138   : > { %p652_p0 = por %p651_p13, %p650_p12 }
 0x13a   : > { %p653_p1 = pnand %p652_p0, %p646_p9 }
 0x13c   : > { %656 = shalt.err (!%p653_p1)
}
 0x13d   : > { %563 = dma.vmem_to_hbm [thread:$0]  (%p788_p4), %s831_s19, 128, %s829_s28, %s431_s30  }
 0x13e PF: > { %p569_p2 = scmp.ge.s32.totalorder %s707_s26, 2  ;;  %s457_s20 = sand.u32 1, %s687_s21  }
 0x13f   : > { %s458_s27 = scalar_lea.sflag [#allocation3], %s457_s20 }
 0x140   : > { %p566_p3 = pnand %p569_p2, %p795_p8 }
 0x142   : > { %682 = dma.done.wait (!%p566_p3), %s458_s27, 128  }
 0x143   : > { %684 = vsyncadd (!%p566_p3), %s458_s27, 4294967168  ;;  %s19_s26 = sadd.s32 1, %s707_s26   ;;  %s886_s21 = smov %s691_s22 }
 0x144   : > { %p16_p5 = scmp.ge.s32.totalorder %s19_s26, 4   ;;  %s887_s22 = smov %s695_s23 }
 0x145   : > { %s888_s23 = smov %s801_s10  ;;  %s889_s24 = smov %s703_s25 }
 0x146   : > { %s890_s25 = smov %s892_s29  ;;  %18 = sbr.rel (!%p16_p5) target bundleno = 4 (0x4), region = 85 }
 0x14d   :  { %463 = vsyncpa [#allocation3], 1 }
 0x14e   :  { %465 = vsyncpa [#allocation3 + $0x1], 1 }

</bundles_post_ra>
